<compile_context>
chip_gen: v5e
topology: v5e:2x2
jax: 0.10.0
libtpu: 0.0.40
codegen_flags: <defaults>
</compile_context>

<pallas_src>
import functools

import jax
import jax.numpy as jnp
from jax import lax
from jax.experimental import pallas as pl
from jax.experimental.pallas import tpu as pltpu


def _round_up(x, m):
    return (x + m - 1) // m * m


def _itemsize(dt):
    return jnp.dtype(dt).itemsize


def _vmem_budget_bytes():
    """Conservative Pallas-buffer budget that fits every generation (v7x worst)."""
    try:
        cap = int(pltpu.get_tpu_info().vmem_capacity_bytes)
    except Exception:
        cap = 64 * 1024 * 1024  # assume v7x (smallest VMEM) if query fails
    # stay well under the default scoped-VMEM limit (32 MiB on v6e/v7x)
    return min(cap // 4, 24 * 1024 * 1024)


# --------------------------------------------------------------------------
# Kernel 1: batched input projection for all timesteps (one big MXU matmul).
#   gates_x[t*B + b, :] = x[t, b, :] @ Wih^T + (b_ih + b_hh)   (permuted gate cols)
# --------------------------------------------------------------------------
def input_proj_kernel(x_ref, w_ref, b_ref, out_ref):
    # x_ref: (tm, I) matmul dtype; w_ref: (I, 4H) matmul dtype
    # b_ref: (1, 4H) f32;          out_ref: (tm, 4H) gx dtype (bf16 or f32)
    out_ref[...] = (
        jnp.dot(x_ref[...], w_ref[...], preferred_element_type=jnp.float32)
        + b_ref[...]
    ).astype(out_ref.dtype)


# --------------------------------------------------------------------------
# Kernel 2: recurrence over time (grid = (batch blocks, T-chunks)) + final FC.
# Gate layout is the PERMUTED order [i, f, o, g].
# --------------------------------------------------------------------------
def lstm_recurrence_kernel(gx_ref, whh_ref, wfc_ref, bfc_ref, out_ref,
                           h_scr, c_scr, *, t_chunk, hidden_size, seq_len,
                           matmul_dtype):
    # gx_ref : (t_chunk, b_tile, 4H) gx dtype   precomputed input proj (+bias)
    # whh_ref: (H, 4H)    matmul dtype
    # wfc_ref: (H, O_pad) matmul dtype
    # bfc_ref: (1, O_pad) f32
    # out_ref: (b_tile, O_pad) f32              written only on the last T step
    # h_scr, c_scr: (b_tile, H) f32             persist across T grid steps
    t_blk = pl.program_id(1)
    n_tblk = pl.num_programs(1)
    H = hidden_size
    tail = seq_len % t_chunk  # static Python int

    @pl.when(t_blk == 0)
    def _():
        h_scr[...] = jnp.zeros_like(h_scr)
        c_scr[...] = jnp.zeros_like(c_scr)

    whh = whh_ref[...]

    def step(tt, carry):
        h, c = carry
        gx = gx_ref[tt].astype(jnp.float32)              # (b_tile, 4H)
        gates = gx + jnp.dot(h.astype(matmul_dtype), whh,
                             preferred_element_type=jnp.float32)
        # Permuted gate order [i, f, o, g]: one sigmoid over the first 3H cols,
        # one tanh over the last H cols (half the transcendental work).
        sig = jax.nn.sigmoid(gates[:, 0:3 * H])
        i_g = sig[:, 0:H]
        f_g = sig[:, H:2 * H]
        o_g = sig[:, 2 * H:3 * H]
        g_g = jnp.tanh(gates[:, 3 * H:4 * H])
        c_new = f_g * c + i_g * g_g
        h_new = o_g * jnp.tanh(c_new)
        if tail == 0:
            return h_new, c_new
        # Tail chunk: ignore timesteps past the end of the sequence.
        valid = (t_blk * t_chunk + tt) < seq_len
        return (jnp.where(valid, h_new, h), jnp.where(valid, c_new, c))

    h, c = lax.fori_loop(0, t_chunk, step, (h_scr[...], c_scr[...]),
                         unroll=True)
    h_scr[...] = h
    c_scr[...] = c

    @pl.when(t_blk == n_tblk - 1)
    def _():
        out_ref[...] = (
            jnp.dot(h.astype(matmul_dtype), wfc_ref[...],
                    preferred_element_type=jnp.float32)
            + bfc_ref[...]
        ).astype(out_ref.dtype)


# --------------------------------------------------------------------------
# Wrapper
# --------------------------------------------------------------------------
def base_model_forward(x_btI, params, *, matmul_dtype=jnp.bfloat16,
                       t_chunk=None):
    """x_btI: (B, T, I) float32 (batch_first, like PyTorch)."""
    w_ih, w_hh, b_ih, b_hh, w_fc, b_fc = params
    B, T, I = x_btI.shape
    H = w_hh.shape[1]
    O = w_fc.shape[0]

    is_bf16 = jnp.dtype(matmul_dtype) == jnp.dtype(jnp.bfloat16)
    gx_dtype = jnp.bfloat16 if is_bf16 else jnp.float32

    pack = 16 if is_bf16 else 8              # sublane packing of matmul dtype
    B_pad = _round_up(max(B, pack), pack)
    O_pad = _round_up(max(O, 128), 128)      # lane-dense final store

    vmem_budget = _vmem_budget_bytes()

    # ---- one-time weight reshuffle: PyTorch gate order [i,f,g,o] -> [i,f,o,g] ----
    def _perm_rows(m):  # operates on the leading 4H axis
        return jnp.concatenate([m[0:2 * H], m[3 * H:4 * H], m[2 * H:3 * H]],
                               axis=0)

    w_ih_p = _perm_rows(w_ih)                # (4H, I)
    w_hh_p = _perm_rows(w_hh)                # (4H, H)
    b_p = _perm_rows(b_ih + b_hh)            # (4H,)

    # ---- layout prep (plain JAX glue) ----
    x_tbi = jnp.transpose(x_btI, (1, 0, 2))                     # (T, B, I)
    x_tbi = jnp.pad(x_tbi, ((0, 0), (0, B_pad - B), (0, 0)))    # (T, Bp, I)
    x_flat = x_tbi.reshape(T * B_pad, I).astype(matmul_dtype)   # (T*Bp, I)

    wih_t = jnp.transpose(w_ih_p).astype(matmul_dtype)          # (I, 4H)
    whh_t = jnp.transpose(w_hh_p).astype(matmul_dtype)          # (H, 4H)
    b_comb = b_p.reshape(1, 4 * H).astype(jnp.float32)
    wfc_t = jnp.pad(jnp.transpose(w_fc),
                    ((0, 0), (0, O_pad - O))).astype(matmul_dtype)   # (H, Opad)
    bfc = jnp.pad(b_fc, (0, O_pad - O)).reshape(1, O_pad).astype(jnp.float32)

    # ---- kernel 1: gates_x for all timesteps ----
    TB = T * B_pad  # multiple of 8 (and of 16 on the bf16 path)
    k1_row_bytes = I * _itemsize(matmul_dtype) + 4 * H * _itemsize(gx_dtype)
    k1_resident = 2 * (I * 4 * H * _itemsize(matmul_dtype) + 4 * H * 4)
    tm_budget = max(16 * k1_row_bytes, vmem_budget - k1_resident)
    tm = int(min(512, TB, max(8, (tm_budget // (2 * k1_row_bytes)) // 8 * 8)))

    gates_x = pl.pallas_call(
        input_proj_kernel,
        out_shape=jax.ShapeDtypeStruct((TB, 4 * H), gx_dtype),
        grid=(pl.cdiv(TB, tm),),
        in_specs=[
            pl.BlockSpec((tm, I), lambda r: (r, 0)),
            pl.BlockSpec((I, 4 * H), lambda r: (0, 0)),
            pl.BlockSpec((1, 4 * H), lambda r: (0, 0)),
        ],
        out_specs=pl.BlockSpec((tm, 4 * H), lambda r: (r, 0)),
        compiler_params=pltpu.CompilerParams(
            dimension_semantics=("parallel",)),
    )(x_flat, wih_t, b_comb)
    gates_x = gates_x.reshape(T, B_pad, 4 * H)

    # ---- kernel 2: recurrence + FC ----
    # v7x: split the batch over the two TensorCores when there is enough work.
    if B_pad >= 2 * pack and (B_pad // 2) % pack == 0:
        b_tile = B_pad // 2
    else:
        b_tile = B_pad
    n_bblk = B_pad // b_tile

    if t_chunk is None:
        gx_row_bytes = B_pad * 4 * H * _itemsize(gx_dtype)
        w_bytes = 2 * (H * 4 * H + H * O_pad) * _itemsize(matmul_dtype) \
            + 2 * O_pad * 4
        scratch_bytes = 2 * b_tile * H * 4 + 2 * b_tile * O_pad * 4
        gx_budget = max(2 * gx_row_bytes, vmem_budget - w_bytes - scratch_bytes)
        # cap the static unroll so code size / vreg pressure stay sane
        t_chunk = int(max(1, min(T, gx_budget // (2 * gx_row_bytes), 64)))
    n_tblk = pl.cdiv(T, t_chunk)

    rec_kernel = functools.partial(
        lstm_recurrence_kernel,
        t_chunk=t_chunk, hidden_size=H, seq_len=T, matmul_dtype=matmul_dtype)

    out_pad = pl.pallas_call(
        rec_kernel,
        out_shape=jax.ShapeDtypeStruct((B_pad, O_pad), jnp.float32),
        grid=(n_bblk, n_tblk),
        in_specs=[
            pl.BlockSpec((t_chunk, b_tile, 4 * H), lambda b, t: (t, b, 0)),
            pl.BlockSpec((H, 4 * H), lambda b, t: (0, 0)),
            pl.BlockSpec((H, O_pad), lambda b, t: (0, 0)),
            pl.BlockSpec((1, O_pad), lambda b, t: (0, 0)),
        ],
        out_specs=pl.BlockSpec((b_tile, O_pad), lambda b, t: (b, 0)),
        scratch_shapes=[
            pltpu.VMEM((b_tile, H), jnp.float32),  # h
            pltpu.VMEM((b_tile, H), jnp.float32),  # c
        ],
        compiler_params=pltpu.CompilerParams(
            dimension_semantics=("parallel", "arbitrary")),
    )(gates_x, whh_t, wfc_t, bfc)

    return out_pad[:B, :O]


# --------------------------------------------------------------------------
# Parameter init (PyTorch defaults) and pure-JAX reference
# --------------------------------------------------------------------------
def init_params(key, input_size, hidden_size, output_size):
    k = jax.random.split(key, 6)
    s_lstm = 1.0 / jnp.sqrt(hidden_size)
    s_fc = 1.0 / jnp.sqrt(hidden_size)
    w_ih = jax.random.uniform(k[0], (4 * hidden_size, input_size), jnp.float32, -s_lstm, s_lstm)
    w_hh = jax.random.uniform(k[1], (4 * hidden_size, hidden_size), jnp.float32, -s_lstm, s_lstm)
    b_ih = jax.random.uniform(k[2], (4 * hidden_size,), jnp.float32, -s_lstm, s_lstm)
    b_hh = jax.random.uniform(k[3], (4 * hidden_size,), jnp.float32, -s_lstm, s_lstm)
    w_fc = jax.random.uniform(k[4], (output_size, hidden_size), jnp.float32, -s_fc, s_fc)
    b_fc = jax.random.uniform(k[5], (output_size,), jnp.float32, -s_fc, s_fc)
    return (w_ih, w_hh, b_ih, b_hh, w_fc, b_fc)


def reference_forward(x_btI, params):
    w_ih, w_hh, b_ih, b_hh, w_fc, b_fc = params
    B, T, I = x_btI.shape
    H = w_hh.shape[1]
    h = jnp.zeros((B, H), jnp.float32)
    c = jnp.zeros((B, H), jnp.float32)
    for t in range(T):
        gates = x_btI[:, t, :] @ w_ih.T + b_ih + h @ w_hh.T + b_hh
        i_g = jax.nn.sigmoid(gates[:, 0:H])
        f_g = jax.nn.sigmoid(gates[:, H:2 * H])
        g_g = jnp.tanh(gates[:, 2 * H:3 * H])
        o_g = jax.nn.sigmoid(gates[:, 3 * H:4 * H])
        c = f_g * c + i_g * g_g
        h = o_g * jnp.tanh(c)
    return h @ w_fc.T + b_fc


if __name__ == "__main__":
    batch, seq, input_size, hidden_size, output_size = 2, 8, 16, 32, 8

    key = jax.random.PRNGKey(0)
    k_x, k_p = jax.random.split(key)
    x = jax.random.normal(k_x, (batch, seq, input_size), jnp.float32)
    params = init_params(k_p, input_size, hidden_size, output_size)

    ref = reference_forward(x, params)

    # f32 MXU path: structural check against the reference.
    out_f32 = jax.block_until_ready(
        base_model_forward(x, params, matmul_dtype=jnp.float32))
    assert out_f32.shape == (batch, output_size)
    assert jnp.allclose(out_f32, ref, atol=1e-4, rtol=1e-4), \
        "Pallas kernel (f32) mismatch vs reference"

    # Also exercise a non-divisor t_chunk to cover the masked tail path.
    out_f32_tail = jax.block_until_ready(
        base_model_forward(x, params, matmul_dtype=jnp.float32, t_chunk=3))
    assert jnp.allclose(out_f32_tail, ref, atol=1e-4, rtol=1e-4), \
        "Pallas kernel (f32, tail chunk) mismatch vs reference"

    # bf16 MXU-operand / bf16 gates_x path (fast path), f32 accumulation/state.
    out_bf16 = jax.block_until_ready(
        base_model_forward(x, params, matmul_dtype=jnp.bfloat16))
    assert out_bf16.shape == (batch, output_size)
    assert jnp.allclose(out_bf16, ref, atol=5e-2, rtol=5e-2), \
        "Pallas kernel (bf16 operands) mismatch vs reference"

    print("KERNEL_OK")
</pallas_src>

<mosaic_0001>
module attributes {stable_mosaic.version = 11 : i64} {
  func.func @input_proj_kernel(%arg0: i32, %arg1: memref<64x16xf32, #tpu.memory_space<vmem>>, %arg2: memref<16x128xf32, #tpu.memory_space<vmem>>, %arg3: memref<1x128xf32, #tpu.memory_space<vmem>>, %arg4: memref<64x128xf32, #tpu.memory_space<vmem>>) attributes {dimension_semantics = [#tpu.dimension_semantics<parallel>], iteration_bounds = array<i64: 1>, scalar_prefetch = 0 : i64, scratch_operands = 0 : i64, tpu.core_type = #tpu.core_type<tc>, window_params = [{transform_indices = @transform_0, window_bounds = array<i64: 64, 16>}, {pipeline_mode = #tpu.pipeline_mode<synchronous>, transform_indices = @transform_1, window_bounds = array<i64: 16, 128>}, {pipeline_mode = #tpu.pipeline_mode<synchronous>, transform_indices = @transform_2, window_bounds = array<i64: 1, 128>}, {transform_indices = @transform_3, window_bounds = array<i64: 64, 128>}]} {
    %c0 = arith.constant 0 : index
    %c0_0 = arith.constant 0 : index
    %0 = vector.load %arg1[%c0, %c0_0] : memref<64x16xf32, #tpu.memory_space<vmem>>, vector<64x16xf32>
    %c0_1 = arith.constant 0 : index
    %c0_2 = arith.constant 0 : index
    %1 = vector.load %arg2[%c0_1, %c0_2] : memref<16x128xf32, #tpu.memory_space<vmem>>, vector<16x128xf32>
    %cst = arith.constant dense<0.000000e+00> : vector<64x128xf32>
    %2 = tpu.matmul %0, %1, %cst {dimension_numbers = #tpu.dot_dimension_numbers<[1], [0], [0], [1], [0, 0, 1, 1], [], []>} : vector<64x16xf32>, vector<16x128xf32>, vector<64x128xf32> -> vector<64x128xf32>
    %c0_3 = arith.constant 0 : index
    %c0_4 = arith.constant 0 : index
    %3 = vector.load %arg3[%c0_3, %c0_4] : memref<1x128xf32, #tpu.memory_space<vmem>>, vector<1x128xf32>
    %4 = vector.broadcast %3 : vector<1x128xf32> to vector<64x128xf32>
    %5 = arith.addf %2, %4 : vector<64x128xf32>
    %c0_5 = arith.constant 0 : index
    %c0_6 = arith.constant 0 : index
    %6 = vector.load %arg4[%c0_5, %c0_6] : memref<64x128xf32, #tpu.memory_space<vmem>>, vector<64x128xf32>
    tpu.vector_store %arg4[%c0_5, %c0_6], %5 {strides = array<i32>} : memref<64x128xf32, #tpu.memory_space<vmem>>, vector<64x128xf32>,
    return
  }
  func.func @transform_0(%arg0: i32) -> (i32, i32) {
    %c0_i32 = arith.constant 0 : i32
    %c0_i32_0 = arith.constant 0 : i32
    return %arg0, %c0_i32 : i32, i32
  }
  func.func @transform_1(%arg0: i32) -> (i32, i32) {
    %c0_i32 = arith.constant 0 : i32
    %c0_i32_0 = arith.constant 0 : i32
    %c0_i32_1 = arith.constant 0 : i32
    return %c0_i32, %c0_i32_0 : i32, i32
  }
  func.func @transform_2(%arg0: i32) -> (i32, i32) {
    %c0_i32 = arith.constant 0 : i32
    %c0_i32_0 = arith.constant 0 : i32
    %c0_i32_1 = arith.constant 0 : i32
    return %c0_i32, %c0_i32_0 : i32, i32
  }
  func.func @transform_3(%arg0: i32) -> (i32, i32) {
    %c0_i32 = arith.constant 0 : i32
    %c0_i32_0 = arith.constant 0 : i32
    return %arg0, %c0_i32 : i32, i32
  }
}

</mosaic_0001>

<bundles_post_ra>
// kernel: tpu_custom_call.1
= control target key start
LH: loop header
LB: loop body
LE: loop exit
PB: predicated region body
PF: predicated region fallthrough
CT: control target
= control target key end

     0   :  { %vm29_vm0 = vcmask 130048   ;;  %s232_s0 = inlined_call_operand.vmem [shape: f32[64,16], index: 0, kind: input, shape index: {}]   ;;  %s233_s1 = inlined_call_operand.vmem [shape: f32[16,128], index: 1, kind: input, shape index: {}]   ;;  %s234_s2 = inlined_call_operand.vmem [shape: f32[1,128], index: 2, kind: input, shape index: {}]   ;;  %s235_s3 = inlined_call_operand.hbm [shape: f32[64,128], index: 3, kind: output, shape index: {}]  }
   0x1   :  { %v24_v0 = vld [vmem:[%s233_s1 + $0x8] sm:$0xff]  ;;  %v23_v1 = vld [vmem:[%s233_s1] sm:$0xff]  ;;  %v21_v3 = vld [vmem:[%s232_s0 + $0x30] sm:$0xff] }
   0x2   :  { %130 = vmatpush.msra.mxu2 %v24_v0  ;;  %131 = vmatpush.msra.mxu3 %v24_v0  ;;  %v19_v2 = vld [vmem:[%s232_s0 + $0x20] sm:$0xff]  ;;  %v17_v5 = vld [vmem:[%s232_s0 + $0x10] sm:$0xff] }
   0x3   :  { %68 = vmatpush.msra.mxu0 %v24_v0  ;;  %129 = vmatpush.msra.mxu1 %v24_v0  ;;  %v15_v4 = vld [vmem:[%s232_s0] sm:$0xff] }
   0x4   :  { %133 = vmatpush.msra.mxu2 %v23_v1  ;;  %134 = vmatpush.msra.mxu3 %v23_v1 }
   0x5   :  { %125 = vmatmul.msk.f32.vlgmr.msra.gmra.mxu2 %vm29_vm0, %v19_v2  ;;  %127 = vmatmul.msk.f32.vlgmr.msra.gmra.mxu3 %vm29_vm0, %v21_v3 }
   0x6   :  { %8 = vsyncpa [#allocation3], 0  ;;  %69 = vmatpush.msra.mxu0 %v23_v1  ;;  %132 = vmatpush.msra.mxu1 %v23_v1  ;;  %v20_v6 = vld [vmem:[%s232_s0 + $0x28] sm:$0xff]  ;;  %v22_v7 = vld [vmem:[%s232_s0 + $0x38] sm:$0xff]  ;;  %s109_s8 = sshll.u32 %s235_s3, 4  ;;  %s166_s9 = smov 128   ;;  %s110_s8 = int_to_ptr.hbm [resolvable:$true] %s109_s8 }
   0x7   :  { %121 = vmatmul.msk.f32.vlgmr.msra.gmra.mxu0 %vm29_vm0, %v15_v4  ;;  %123 = vmatmul.msk.f32.vlgmr.msra.gmra.mxu1 %vm29_vm0, %v17_v5  ;;  %v16_v8 = vld [vmem:[%s232_s0 + $0x8] sm:$0xff]  ;;  %v18_v9 = vld [vmem:[%s232_s0 + $0x18] sm:$0xff]  ;;  %v138_v10 = vld [vmem:[%s234_s2] ss:$0 sm:$0xff]  ;;  %s165_s0 = smov [#allocation2]   ;;  %s167_s10 = smov 8  }
   0x8   :  { %s107_s6 = sshll.u32 %s165_s0, 4  ;;  %s108_s6 = int_to_ptr.vmem [resolvable:$true] %s107_s6 }
   0xd   :  { %126 = vmatmul.msk.f32.gmra.mxu2 %vm29_vm0, %v20_v6  ;;  %128 = vmatmul.msk.f32.gmra.mxu3 %vm29_vm0, %v22_v7 }
   0xf   :  { %122 = vmatmul.msk.f32.gmra.mxu0 %vm29_vm0, %v16_v8  ;;  %124 = vmatmul.msk.f32.gmra.mxu1 %vm29_vm0, %v18_v9 }
  0x84   :  { %v71_v11 = vpop.f32.mrf.mxu0  ;;  %v77_v12 = vpop.f32.mrf.mxu1 }
  0x85   :  { %v72_v13 = vadd.f32 %v138_v10, %v71_v11  ;;  %v78_v14 = vadd.f32 %v138_v10, %v77_v12 }
  0x87   :  { %95 = vst [vmem:[#allocation2] sm:$0xff] %v72_v13 }
  0x88   :  { %97 = vst [vmem:[#allocation2 + $0x10] sm:$0xff] %v78_v14  ;;  %v83_v15 = vpop.f32.mrf.mxu2  ;;  %v89_v16 = vpop.f32.mrf.mxu3 }
  0x89   :  { %v84_v17 = vadd.f32 %v138_v10, %v83_v15  ;;  %v90_v18 = vadd.f32 %v138_v10, %v89_v16 }
  0x8b   :  { %99 = vst [vmem:[#allocation2 + $0x20] sm:$0xff] %v84_v17 }
  0x8c   :  { %101 = vst [vmem:[#allocation2 + $0x30] sm:$0xff] %v90_v18  ;;  %v74_v19 = vpop.f32.mrf.mxu0  ;;  %v80_v20 = vpop.f32.mrf.mxu1 }
  0x8d   :  { %v75_v21 = vadd.f32 %v138_v10, %v74_v19  ;;  %v81_v22 = vadd.f32 %v138_v10, %v80_v20 }
  0x8f   :  { %96 = vst [vmem:[#allocation2 + $0x8] sm:$0xff] %v75_v21 }
  0x90   :  { %98 = vst [vmem:[#allocation2 + $0x18] sm:$0xff] %v81_v22  ;;  %v86_v23 = vpop.f32.mrf.mxu2  ;;  %v92_v24 = vpop.f32.mrf.mxu3 }
  0x91   :  { %v87_v25 = vadd.f32 %v138_v10, %v86_v23  ;;  %v93_v26 = vadd.f32 %v138_v10, %v92_v24 }
  0x93   :  { %100 = vst [vmem:[#allocation2 + $0x28] sm:$0xff] %v87_v25 }
  0x94   :  { %102 = vst [vmem:[#allocation2 + $0x38] sm:$0xff] %v93_v26 }
  0x95   :  { %115 = dma.vmem_to_hbm [thread:$0]  %s108_s6, 1024, %s110_s8, [#allocation3], %s166_s9, %s166_s9, %s167_s10  }
  0x96   :  { %163 = dma.done.wait [#allocation3], 1024  }
  0x97   :  { %164 = vsyncadd [#allocation3], 4294966272 }
  0x98   :  { %120 = vsyncpa [#allocation3], 1 }

</bundles_post_ra>
